<compile_context>
chip_gen: v7x
topology: tpu7x:2x2x1
jax: 0.10.0
libtpu: 0.0.40
codegen_flags: <defaults>
</compile_context>

<pallas_src>
import functools

import jax
import jax.numpy as jnp
from jax.experimental import pallas as pl
from jax.experimental.pallas import tpu as pltpu


def _round_up(x, m):
    return (x + m - 1) // m * m


def _cdiv(a, b):
    return -(-a // b)


def _tconv_kernel(*refs, kt, n, c_out, act, glu_split):
    """One (batch, lane-tile) step: fused temporal conv + residual + act.

    refs: x_cur, [x_halo], W, b, [Wq, bq], out
      x_cur : (1, c_in, tm)       current lane tile of flattened (T*N) input
      x_halo: (1, c_in, halo_pad) first (kt-1)*N lanes of the next tile
      W     : (c_rows, kt*c_in)   tap-fused weights (align/residual folded in)
      b     : (c_rows, 1)         f32 bias
      out   : (1, c_out, tm)
    """
    idx = 0
    xc_ref = refs[idx]; idx += 1
    xh_ref = None
    if kt > 1:
        xh_ref = refs[idx]; idx += 1
    w_ref = refs[idx]; b_ref = refs[idx + 1]; idx += 2
    if glu_split:
        wq_ref = refs[idx]; bq_ref = refs[idx + 1]; idx += 2
    o_ref = refs[idx]

    x_cur = xc_ref[0]                                    # (c_in, tm)
    if kt > 1:
        halo = xh_ref[0]                                 # (c_in, halo_pad)
        tm = x_cur.shape[-1]
        wins = [x_cur]
        for k in range(1, kt):
            kk = k * n
            if kk < tm:
                wins.append(jnp.concatenate(
                    [x_cur[:, kk:], halo[:, :kk]], axis=-1))
            else:                                        # whole window in halo
                wins.append(halo[:, :tm])
        xw = jnp.concatenate(wins, axis=0)               # (kt*c_in, tm)
    else:
        xw = x_cur

    def mm(wr, br):
        acc = jnp.dot(wr[...], xw, preferred_element_type=jnp.float32)
        return acc + br[...]                             # bias stays f32

    if act == 'GLU':
        if glu_split:                                    # c_out % 8 != 0
            p = mm(w_ref, b_ref)
            q = mm(wq_ref, bq_ref)
        else:                                            # fused (2*c_out) rows
            acc = mm(w_ref, b_ref)
            p, q = acc[:c_out], acc[c_out:]
        res = p * jax.nn.sigmoid(q)
    elif act == 'sigmoid':
        res = jax.nn.sigmoid(mm(w_ref, b_ref))
    else:                                                # relu (torch default)
        res = jnp.maximum(mm(w_ref, b_ref), 0.0)
    o_ref[0] = res.astype(o_ref.dtype)


def init_params(key, kt, c_in, c_out, act):
    c_tot = 2 * c_out if act == 'GLU' else c_out
    k1, k2, k3, k4 = jax.random.split(key, 4)
    params = {
        'conv_w': jax.random.normal(k1, (c_tot, c_in, kt), jnp.float32) * 0.1,
        'conv_b': jax.random.normal(k2, (c_tot,), jnp.float32) * 0.1,
    }
    if c_in > c_out:  # align 1x1 conv parameters
        params['align_w'] = jax.random.normal(k3, (c_out, c_in), jnp.float32) * 0.1
        params['align_b'] = jax.random.normal(k4, (c_out,), jnp.float32) * 0.1
    return params


@functools.partial(jax.jit,
                   static_argnames=('kt', 'c_in', 'c_out', 'act',
                                    'max_lane_tile', 'compute_dtype'))
def temporal_conv_layer_forward(x, params, *, kt, c_in, c_out, act='relu',
                                max_lane_tile=2048, compute_dtype=None):
    """Pallas-backed forward matching the PyTorch temporal_conv_layer."""
    B, C, T, N = x.shape
    assert C == c_in and T >= kt
    assert max_lane_tile % 128 == 0 and max_lane_tile >= 128
    out_dt = x.dtype
    cdt = jnp.dtype(compute_dtype) if compute_dtype is not None else x.dtype

    t_out = T - kt + 1
    m_out = t_out * N                      # valid flattened output lanes
    m_tot = T * N                          # flattened input lanes (= m_out + halo)
    halo_n = (kt - 1) * N                  # temporal halo lanes per tile
    halo_pad = _round_up(halo_n, 128) if kt > 1 else 0

    # --- lane tiling: multiple of 128 and of halo_pad (so the halo BlockSpec
    # can address element offset (j+1)*tm with block granularity halo_pad) ---
    unit = halo_pad if kt > 1 else 128
    tm = min(_round_up(m_out, unit), _round_up(max_lane_tile, unit))
    n_tiles = _cdiv(m_out, tm)
    # v7x has 2 TensorCores: make sure the parallel grid has >= 2 steps.
    if B * n_tiles < 2:
        while n_tiles < 2 and tm > unit:
            tm = max(unit, _round_up(tm // 2, unit))
            n_tiles = _cdiv(m_out, tm)

    # --- fold align (1x1 conv / channel zero-pad / identity) + residual into
    # the conv's last temporal tap + bias ------------------------------------
    if c_in > c_out:
        A = params['align_w']
        a_b = params['align_b']
    else:
        A = jnp.eye(c_out, c_in, dtype=jnp.float32)       # identity / zero-pad
        a_b = jnp.zeros((c_out,), jnp.float32)
    w = params['conv_w'].astype(jnp.float32)              # (c_tot, c_in, kt)
    b = params['conv_b'].astype(jnp.float32)
    w_p = w[:c_out].at[:, :, kt - 1].add(A)               # residual on last tap
    b_p = b[:c_out] + a_b

    def fuse_taps(wk):                 # (rows, c_in, kt) -> (rows, kt*c_in)
        return jnp.transpose(wk, (0, 2, 1)).reshape(wk.shape[0], kt * c_in)

    glu_split = (act == 'GLU') and (c_out % 8 != 0)
    if act == 'GLU' and not glu_split:
        W = jnp.concatenate([fuse_taps(w_p), fuse_taps(w[c_out:])], axis=0)
        bias = jnp.concatenate([b_p, b[c_out:]], axis=0).reshape(-1, 1)
    else:
        W = fuse_taps(w_p)
        bias = b_p.reshape(-1, 1)
    W = W.astype(cdt)
    bias = bias.astype(jnp.float32)

    # --- x: only reshaped (no HBM pad copy).  If compute_dtype differs from
    # x.dtype the cast materializes once; upstream bf16 activations avoid it.
    x_flat = x.reshape(B, c_in, m_tot).astype(cdt)

    inputs = [x_flat]
    in_specs = [pl.BlockSpec((1, c_in, tm), lambda bi, j: (bi, 0, j))]
    if kt > 1:
        bpt = tm // halo_pad                       # halo blocks per lane tile
        last_blk = (m_tot - 1) // halo_pad         # last block starting in bounds
        inputs.append(x_flat)                      # same buffer, small halo view
        in_specs.append(pl.BlockSpec(
            (1, c_in, halo_pad),
            lambda bi, j: (bi, 0, jnp.minimum((j + 1) * bpt, last_blk))))
    inputs += [W, bias]
    in_specs += [pl.BlockSpec(W.shape, lambda bi, j: (0, 0)),       # resident
                 pl.BlockSpec(bias.shape, lambda bi, j: (0, 0))]
    if glu_split:
        Wq = fuse_taps(w[c_out:]).astype(cdt)
        bq = b[c_out:].reshape(-1, 1).astype(jnp.float32)
        inputs += [Wq, bq]
        in_specs += [pl.BlockSpec(Wq.shape, lambda bi, j: (0, 0)),
                     pl.BlockSpec(bq.shape, lambda bi, j: (0, 0))]

    # --- cost / VMEM bookkeeping --------------------------------------------
    in_b = jnp.dtype(cdt).itemsize
    out_b = jnp.dtype(out_dt).itemsize
    c_tot = 2 * c_out if act == 'GLU' else c_out
    flops = 2 * B * m_out * c_tot * kt * c_in
    transc = B * m_out * c_out if act in ('GLU', 'sigmoid') else 0
    bytes_acc = (B * n_tiles * c_in * (tm + halo_pad) * in_b   # x + halo reads
                 + c_tot * kt * c_in * in_b + c_tot * 4        # weights + bias
                 + B * c_out * m_out * out_b)                  # output
    vmem_est = (2 * (c_in * (tm + halo_pad) * in_b + c_out * tm * out_b)
                + 2 * c_tot * kt * c_in * in_b
                + 2 * (kt * c_in * tm * in_b + c_tot * tm * 4))
    vmem_limit = int(min(64 * 2**20, max(32 * 2**20, 4 * vmem_est)))

    kernel = functools.partial(_tconv_kernel, kt=kt, n=N, c_out=c_out,
                               act=act, glu_split=glu_split)
    out = pl.pallas_call(
        kernel,
        out_shape=jax.ShapeDtypeStruct((B, c_out, m_out), out_dt),
        grid=(B, n_tiles),
        in_specs=in_specs,
        out_specs=pl.BlockSpec((1, c_out, tm), lambda bi, j: (bi, 0, j)),
        compiler_params=pltpu.CompilerParams(
            dimension_semantics=("parallel", "parallel"),
            vmem_limit_bytes=vmem_limit),
        cost_estimate=pl.CostEstimate(flops=int(flops),
                                      transcendentals=int(transc),
                                      bytes_accessed=int(bytes_acc)),
    )(*inputs)

    return out.reshape(B, c_out, t_out, N)


# ------------------------- pure-JAX reference ------------------------------
def _align(x, params, c_in, c_out):
    if c_in > c_out:
        return (jnp.einsum('oc,bctn->botn', params['align_w'], x)
                + params['align_b'][None, :, None, None])
    if c_in < c_out:
        return jnp.pad(x, ((0, 0), (0, c_out - c_in), (0, 0), (0, 0)))
    return x


def reference_forward(x, params, *, kt, c_in, c_out, act='relu'):
    x_in = _align(x, params, c_in, c_out)[:, :, kt - 1:, :]
    w4 = params['conv_w'][..., None]                       # (c_tot, c_in, kt, 1)
    conv = jax.lax.conv_general_dilated(
        x, w4, window_strides=(1, 1), padding='VALID',
        dimension_numbers=('NCHW', 'OIHW', 'NCHW'))
    conv = conv + params['conv_b'][None, :, None, None]
    if act == 'GLU':
        return (conv[:, :c_out] + x_in) * jax.nn.sigmoid(conv[:, c_out:])
    if act == 'sigmoid':
        return jax.nn.sigmoid(conv + x_in)
    return jnp.maximum(conv + x_in, 0.0)


if __name__ == "__main__":
    B, T, N = 2, 16, 16
    key = jax.random.PRNGKey(0)

    configs = [
        # (kt, c_in, c_out, act, max_lane_tile, compute_dtype, tol)
        (3, 4, 8, 'GLU', 2048, None, 1e-4),       # channel-pad align + fused GLU
        (3, 8, 8, 'sigmoid', 2048, None, 1e-4),   # identity align
        (3, 8, 4, 'relu', 2048, None, 1e-4),      # 1x1-conv align folded in
        (3, 4, 8, 'GLU', 128, None, 1e-4),        # multi lane-tile + halo path
        (3, 4, 4, 'GLU', 2048, None, 1e-4),       # GLU split path (c_out % 8 != 0)
        (1, 4, 8, 'relu', 2048, None, 1e-4),      # kt == 1 (no halo input)
        (3, 8, 8, 'GLU', 2048, jnp.bfloat16, 5e-2),  # bf16 MXU operands, f32 acc
    ]

    for kt, c_in, c_out, act, mlt, cdt, tol in configs:
        kp, kx, key = jax.random.split(key, 3)
        params = init_params(kp, kt, c_in, c_out, act)
        x = jax.random.normal(kx, (B, c_in, T, N), jnp.float32)

        out = temporal_conv_layer_forward(
            x, params, kt=kt, c_in=c_in, c_out=c_out, act=act,
            max_lane_tile=mlt, compute_dtype=cdt)
        out = jax.block_until_ready(out)

        ref = reference_forward(x, params, kt=kt, c_in=c_in, c_out=c_out, act=act)
        assert out.shape == (B, c_out, T - kt + 1, N), (out.shape, act, mlt)
        assert jnp.allclose(out, ref, atol=tol, rtol=tol), \
            f"mismatch for kt={kt}, c_in={c_in}, c_out={c_out}, act={act}, " \
            f"tile={mlt}, dtype={cdt}"

    print("KERNEL_OK")
</pallas_src>

<mosaic_0001>
module attributes {stable_mosaic.version = 11 : i64} {
  func.func @_tconv_kernel(%arg0: i32, %arg1: i32, %arg2: memref<1x4x256xf32, #tpu.memory_space<vmem>>, %arg3: memref<1x4x128xf32, #tpu.memory_space<vmem>>, %arg4: memref<16x12xf32, #tpu.memory_space<vmem>>, %arg5: memref<16x1xf32, #tpu.memory_space<vmem>>, %arg6: memref<1x8x256xf32, #tpu.memory_space<vmem>>) attributes {dimension_semantics = [#tpu.dimension_semantics<parallel>, #tpu.dimension_semantics<parallel>], iteration_bounds = array<i64: 2, 1>, scalar_prefetch = 0 : i64, scratch_operands = 0 : i64, tpu.core_type = #tpu.core_type<tc>, window_params = [{transform_indices = @transform_0, window_bounds = array<i64: 1, 4, 256>}, {transform_indices = @transform_1, window_bounds = array<i64: 1, 4, 128>}, {pipeline_mode = #tpu.pipeline_mode<synchronous>, transform_indices = @transform_2, window_bounds = array<i64: 16, 12>}, {pipeline_mode = #tpu.pipeline_mode<synchronous>, transform_indices = @transform_3, window_bounds = array<i64: 16, 1>}, {transform_indices = @transform_4, window_bounds = array<i64: 1, 8, 256>}]} {
    %c0 = arith.constant 0 : index
    %c0_0 = arith.constant 0 : index
    %c0_1 = arith.constant 0 : index
    %0 = vector.load %arg2[%c0, %c0_0, %c0_1] : memref<1x4x256xf32, #tpu.memory_space<vmem>>, vector<1x4x256xf32>
    %1 = vector.shape_cast %0 : vector<1x4x256xf32> to vector<4x256xf32>
    %c0_2 = arith.constant 0 : index
    %c0_3 = arith.constant 0 : index
    %c0_4 = arith.constant 0 : index
    %2 = vector.load %arg3[%c0_2, %c0_3, %c0_4] : memref<1x4x128xf32, #tpu.memory_space<vmem>>, vector<1x4x128xf32>
    %3 = vector.shape_cast %2 : vector<1x4x128xf32> to vector<4x128xf32>
    %4 = vector.extract_strided_slice %1 {offsets = [0, 16], sizes = [4, 240], strides = [1, 1]} : vector<4x256xf32> to vector<4x240xf32>
    %5 = vector.extract_strided_slice %3 {offsets = [0, 0], sizes = [4, 16], strides = [1, 1]} : vector<4x128xf32> to vector<4x16xf32>
    %6 = tpu.concatenate %4, %5 in 1 : vector<4x240xf32>, vector<4x16xf32> -> vector<4x256xf32>
    %7 = vector.extract_strided_slice %1 {offsets = [0, 32], sizes = [4, 224], strides = [1, 1]} : vector<4x256xf32> to vector<4x224xf32>
    %8 = vector.extract_strided_slice %3 {offsets = [0, 0], sizes = [4, 32], strides = [1, 1]} : vector<4x128xf32> to vector<4x32xf32>
    %9 = tpu.concatenate %7, %8 in 1 : vector<4x224xf32>, vector<4x32xf32> -> vector<4x256xf32>
    %10 = tpu.concatenate %1, %6, %9 in 0 : vector<4x256xf32>, vector<4x256xf32>, vector<4x256xf32> -> vector<12x256xf32>
    %c0_5 = arith.constant 0 : index
    %c0_6 = arith.constant 0 : index
    %11 = vector.load %arg4[%c0_5, %c0_6] : memref<16x12xf32, #tpu.memory_space<vmem>>, vector<16x12xf32>
    %cst = arith.constant dense<0.000000e+00> : vector<16x256xf32>
    %12 = tpu.matmul %11, %10, %cst {dimension_numbers = #tpu.dot_dimension_numbers<[1], [0], [0], [1], [0, 0, 1, 1], [], []>} : vector<16x12xf32>, vector<12x256xf32>, vector<16x256xf32> -> vector<16x256xf32>
    %c0_7 = arith.constant 0 : index
    %c0_8 = arith.constant 0 : index
    %13 = vector.load %arg5[%c0_7, %c0_8] : memref<16x1xf32, #tpu.memory_space<vmem>>, vector<16x1xf32>
    %14 = vector.broadcast %13 : vector<16x1xf32> to vector<16x256xf32>
    %15 = arith.addf %12, %14 : vector<16x256xf32>
    %16 = vector.extract_strided_slice %15 {offsets = [0, 0], sizes = [8, 256], strides = [1, 1]} : vector<16x256xf32> to vector<8x256xf32>
    %17 = vector.extract_strided_slice %15 {offsets = [8, 0], sizes = [8, 256], strides = [1, 1]} : vector<16x256xf32> to vector<8x256xf32>
    %18 = arith.negf %17 : vector<8x256xf32>
    %19 = math.exp %18 : vector<8x256xf32>
    %cst_9 = arith.constant 1.000000e+00 : f32
    %20 = vector.broadcast %cst_9 : f32 to vector<8x256xf32>
    %21 = arith.addf %20, %19 : vector<8x256xf32>
    %22 = arith.divf %20, %21 : vector<8x256xf32>
    %23 = arith.mulf %16, %22 : vector<8x256xf32>
    %c0_10 = arith.constant 0 : index
    %c0_11 = arith.constant 0 : index
    %c0_12 = arith.constant 0 : index
    %24 = vector.load %arg6[%c0_10, %c0_11, %c0_12] : memref<1x8x256xf32, #tpu.memory_space<vmem>>, vector<1x8x256xf32>
    %25 = vector.shape_cast %24 : vector<1x8x256xf32> to vector<8x256xf32>
    %26 = vector.shape_cast %23 : vector<8x256xf32> to vector<1x8x256xf32>
    tpu.vector_store %arg6[%c0_10, %c0_11, %c0_12], %26 {strides = array<i32>} : memref<1x8x256xf32, #tpu.memory_space<vmem>>, vector<1x8x256xf32>,
    return
  }
  func.func @transform_0(%arg0: i32, %arg1: i32) -> (i32, i32, i32) {
    %c0_i32 = arith.constant 0 : i32
    %c0_i32_0 = arith.constant 0 : i32
    return %arg0, %c0_i32, %arg1 : i32, i32, i32
  }
  func.func @transform_1(%arg0: i32, %arg1: i32) -> (i32, i32, i32) {
    %c1_i32 = arith.constant 1 : i32
    %0 = arith.addi %arg1, %c1_i32 : i32
    %c2_i32 = arith.constant 2 : i32
    %1 = arith.muli %0, %c2_i32 : i32
    %c1_i32_0 = arith.constant 1 : i32
    %2 = arith.minsi %1, %c1_i32_0 : i32
    %c0_i32 = arith.constant 0 : i32
    %c0_i32_1 = arith.constant 0 : i32
    return %arg0, %c0_i32, %2 : i32, i32, i32
  }
  func.func @transform_2(%arg0: i32, %arg1: i32) -> (i32, i32) {
    %c0_i32 = arith.constant 0 : i32
    %c0_i32_0 = arith.constant 0 : i32
    %c0_i32_1 = arith.constant 0 : i32
    return %c0_i32, %c0_i32_0 : i32, i32
  }
  func.func @transform_3(%arg0: i32, %arg1: i32) -> (i32, i32) {
    %c0_i32 = arith.constant 0 : i32
    %c0_i32_0 = arith.constant 0 : i32
    %c0_i32_1 = arith.constant 0 : i32
    return %c0_i32, %c0_i32_0 : i32, i32
  }
  func.func @transform_4(%arg0: i32, %arg1: i32) -> (i32, i32, i32) {
    %c0_i32 = arith.constant 0 : i32
    %c0_i32_0 = arith.constant 0 : i32
    return %arg0, %c0_i32, %arg1 : i32, i32, i32
  }
}

</mosaic_0001>

<bundles_post_ra>
// kernel: temporal_conv_layer_forward.1
= control target key start
LH: loop header
LB: loop body
LE: loop exit
PB: predicated region body
PF: predicated region fallthrough
CT: control target
= control target key end

     0   :  { %s692_s15 = smov 0   ;;  %s694_s16 = smov 0   ;;  %s746_s0 = inlined_call_operand.vmem [shape: f32[2,4,256], index: 0, kind: input, shape index: {}, may-alias: {0,1}]   ;;  %s747_s1 = inlined_call_operand.vmem [shape: f32[2,4,256], index: 1, kind: input, shape index: {}, may-alias: {0,1}]   ;;  %s748_s2 = inlined_call_operand.vmem [shape: f32[16,12], index: 2, kind: input, shape index: {}]   ;;  %s749_s3 = inlined_call_operand.vmem [shape: f32[16,1], index: 3, kind: input, shape index: {}]   ;;  %s750_s4 = inlined_call_operand.vmem [shape: f32[2,8,224], index: 4, kind: output, shape index: {}]  }
   0x1   :  { %s696_s17 = smov 0  }
   0x2 LB: > { %s26_s18 = sadd.s32 1, %s656_s16  ;;  %p560_p0 = scmp.ge.s32.totalorder %s660_s17, 1  ;;  %s660_s17 = sphi %s696_s17, %s14_s17   ;;  %s656_s16 = sphi %s694_s16, %s752_s16   ;;  %s652_s15 = sphi %s692_s15, %s751_s15  }
   0x3   : > { %p28_p1 = scmp.ge.s32.totalorder %s26_s18, 2  ;;  %p214_p2 = scmp.lt.s32.totalorder %s660_s17, 3 }
   0x5   : > { %s754_s18 = smov (%p28_p1, %s26_s18), 0  ;;  %p215_p3 = pnand %p560_p0, %p214_p2 }
   0x6   : > { %p261_p4 = scmp.lt.s32.totalorder (!%p215_p3), %s652_s15, 1  ;;  %v662_v4 = vmov (!%p215_p3), 0.0   ;;  %s663_s27 = smov (!%p215_p3), 112   ;;  %v665_v5 = vmov (!%p215_p3), 0   ;;  %v335_v6 = vld [vmem:[%s749_s3 + $0x8] sm:$0xff] (!%p215_p3)  ;;  %v334_v7 = vld [vmem:[%s749_s3] sm:$0xff] (!%p215_p3) }
   0x7   : > { %218 = sbr.rel (%p215_p3) target bundleno = 394 (0x18a), region = 36  ;;  %428 = vmatprep.mubr.f32.mxu1 (!%p215_p3), %v662_v4  ;;  %422 = vmatprep.mubr.f32.mxu0 (!%p215_p3), %v662_v4  ;;  %s664_s28 = smov (!%p215_p3), 96   ;;  %vm304_vm0 = vcmask (!%p215_p3), 916480   ;;  %vm316_vm1 = vcmask (!%p215_p3), 785408   ;;  %vm329_vm2 = vcmask (!%p215_p3), 1043456   ;;  %vm666_vm3 = vmmov (!%p215_p3), 1  }
   0x8   : > { %627 = vset.pattern.permute.xlu0 (!%p215_p3), %v665_v5  ;;  %628 = vset.pattern.permute.xlu1 (!%p215_p3), %v665_v5  ;;  %vm581_vm4 = vmpackc.low (!%p215_p3), %vm329_vm2, %vm666_vm3  ;;  %v333_v26 = vld [vmem:[%s748_s2 + $0x8] sm:$0xff] (!%p215_p3)  ;;  %vm346_vm5 = vcmask (!%p215_p3), 97280   ;;  %v332_v27 = vld [vmem:[%s748_s2] sm:$0xff] (!%p215_p3) }
   0xe   : > { %s756_s15 = smov (!%p261_p4, %s652_s15), 1 }
   0xf   : > { %s575_s19 = sshll.u32 %s756_s15, 3  ;;  %s578_s11 = sshll.u32 %s756_s15, 4 }
  0x10   : > { %s268_s22 = scalar_lea.vmem %s746_s0, %s575_s19  ;;  %s577_s23 = sadd.s32 4, %s575_s19 }
  0x11   : > { %s281_s26 = scalar_lea.vmem %s747_s1, %s577_s23  ;;  %v296_v0 = vld [vmem:[%s268_s22] sm:$0xff]  ;;  %s294_s14 = scalar_lea.vmem %s750_s4, %s578_s11 }
  0x12   : > { %v297_v1 = vld [vmem:[%s281_s26] sm:$0xf]  ;;  %v299_v2 = vcombine.high %v296_v0, %v296_v0 }
  0x14   : > { %v617_v3 = vpack.i.bf16 %v297_v1, %v299_v2 }
  0x16   : > { %618 = vrot.lane.b32.xlu0 %v617_v3, %s663_s27  ;;  %623 = vrot.lane.b32.xlu1 %v617_v3, %s664_s28 }
  0x1a   : > { %300 = vrot.lane.b32.xlu0 %v296_v0, %s663_s27  ;;  %312 = vrot.lane.b32.xlu1 %v296_v0, %s664_s28 }
  0x1e   : > { %343 = vperm.xlu0 %627, %v335_v6   ;;  %338 = vperm.xlu1 %628, %v334_v7  }
  0x88   : > { %v619_v8 = vpop.permute.xlu0 %618  ;;  %v624_v9 = vpop.permute.xlu1 %623 }
  0x89   : > { %v621_v10 = vunpack.i.h.bf16 %v619_v8  ;;  %v620_v11 = vunpack.i.l.bf16 %v619_v8  ;;  %v626_v12 = vunpack.i.h.bf16 %v624_v9  ;;  %v625_v13 = vunpack.i.l.bf16 %v624_v9 }
  0x8b   : > { %v311_v14 = vsel %vm304_vm0, %v620_v11, %v621_v10  ;;  %v322_v17 = vsel %vm316_vm1, %v625_v13, %v626_v12 }
  0x8c   : > { %v301_v15 = vpop.permute.xlu0 %300  ;;  %v326_v16 = vrot.slane %v311_v14, 4  ;;  %v313_v19 = vpop.permute.xlu1 %312 }
  0x8d   : > { %v305_v18 = vsel %vm304_vm0, %v301_v15, %v620_v11  ;;  %v317_v23 = vsel %vm316_vm1, %v313_v19, %v625_v13 }
  0x8e   : > { %v325_v20 = vrot.slane %v305_v18, 4  ;;  %v331_v21 = vsel %vm329_vm2, %v299_v2, %v326_v16 }
  0x8f   : > { %v580_v22 = vpack.c.bf16 %v322_v17, %v331_v21 }
  0x90   : > { %v330_v24 = vsel %vm329_vm2, %v296_v0, %v325_v20 }
  0x91   : > { %v583_v25 = vpack.c.bf16 %v317_v23, %v330_v24  ;;  %582 = vmatprep.subr.msk.bf16.mxu0 %vm581_vm4, %v580_v22  ;;  %586 = vmatprep.subr.msk.bf16.mxu1 %vm581_vm4, %v580_v22 }
  0x93   : > { %585 = vmatpush1.bf16.msk.msra.mxu0 %vm581_vm4, %v583_v25  ;;  %587 = vmatpush1.bf16.msk.msra.mxu1 %vm581_vm4, %v583_v25 }
  0x96   : > { %570 = vmatmul.mubr.msk.f32.vlgmr.msra.gmra.mrb[0].mxu1 %vm346_vm5, %v333_v26  ;;  %569 = vmatmul.mubr.msk.f32.vlgmr.msra.gmra.mrb[0].mxu0 %vm346_vm5, %v332_v27 }
  0x9d   : > { %v344_v28 = vpop.permute.xlu0 %343  ;;  %v339_v41 = vpop.permute.xlu1 %338 }
 0x169   : > { %v430_v29 = vpop.f32.mrb[0].mxu1  ;;  %v424_v30 = vpop.f32.mrb[0].mxu0 }
 0x16a   : > { %v431_v31 = vadd.f32 %v430_v29, %v344_v28  ;;  %v432_v32 = vpop.f32.mrb[1].mxu1  ;;  %v426_v33 = vpop.f32.mrb[1].mxu0  ;;  %v425_v42 = vadd.f32 %v424_v30, %v339_v41 }
 0x16b   : > { %v433_v34 = vadd.f32 %v432_v32, %v344_v28  ;;  %v427_v43 = vadd.f32 %v426_v33, %v339_v41 }
 0x16c   : > { %v571_v35 = vmul.f32 -1.442695, %v431_v31 }
 0x16d   : > { %v572_v36 = vmul.f32 -1.442695, %v433_v34 }
 0x16e   : > { %630 = vpow2.f32 %v571_v35 }
 0x16f   : > { %632 = vpow2.f32 %v572_v36 }
 0x178   : > { %v631_v37 = vpop.eup %630 }
 0x179   : > { %v633_v38 = vpop.eup %632  ;;  %v441_v39 = vadd.f32 1.0, %v631_v37 }
 0x17a   : > { %v442_v40 = vadd.f32 1.0, %v633_v38 }
 0x17b   : > { %634 = vrcp.f32 %v441_v39 }
 0x17c   : > { %636 = vrcp.f32 %v442_v40 }
 0x185   : > { %v635_v44 = vpop.eup %634 }
 0x186   : > { %v637_v45 = vpop.eup %636  ;;  %v447_v46 = vmul.f32 %v635_v44, %v425_v42 }
 0x187   : > { %v448_v47 = vmul.f32 %v637_v45, %v427_v43 }
 0x188   : > { %449 = vst [vmem:[%s294_s14] sm:$0xff] %v447_v46 }
 0x189   : > { %450 = vst [vmem:[%s294_s14 + $0x8] sm:$0xff] %v448_v47 }
 0x18a PF: > { %s14_s17 = sadd.s32 1, %s660_s17   ;;  %s751_s15 = smov %s656_s16 }
 0x18b   : > { %p11_p5 = scmp.ge.s32.totalorder %s14_s17, 4   ;;  %s752_s16 = smov %s754_s18 }
 0x18d   :  { %13 = sbr.rel (!%p11_p5) target bundleno = 2 (0x2), region = 69 }

</bundles_post_ra>
